<compile_context>
chip_gen: v5e
topology: v5e:2x2
jax: 0.10.0
libtpu: 0.0.40
codegen_flags: <defaults>
</compile_context>

<pallas_src>
import functools

import jax
import jax.numpy as jnp
from jax import lax
from jax.experimental import pallas as pl
from jax.experimental.pallas import tpu as pltpu


def get_not_zero_position(x):
    # torch.clamp(torch.clamp(torch.abs(x), 0, 1e-32) * 1e+36, 0, 1)
    return jnp.clip(jnp.clip(jnp.abs(x), 0.0, 1e-32) * 1e36, 0.0, 1.0)


def im2col_t(x_cn, ksize, pad):
    """x_cn: (C, N, D, H, W) -> patches (C*kD*kH*kW, N*D*H*W).

    Column order over (n, d, h, w); row order (c, kd, kh, kw) matching
    w.reshape(Cout, C*kD*kH*kW).  Pure gather glue (plain JAX).
    """
    C, N, D, H, W = x_cn.shape
    kD, kH, kW = ksize
    pD, pH, pW = pad
    xp = jnp.pad(x_cn, ((0, 0), (0, 0), (pD, pD), (pH, pH), (pW, pW)))
    cols = []
    for kd in range(kD):
        for kh in range(kH):
            for kw in range(kW):
                cols.append(
                    xp[:, :, kd:kd + D, kh:kh + H, kw:kw + W].reshape(C, -1))
    patches = jnp.stack(cols, axis=1)                 # (C, kpos, M)
    return patches.reshape(C * kD * kH * kW, -1)      # (K, M)


# ----------------------------- Pallas kernels ------------------------------ #

def _mask_ratio(xp, slide_winsize):
    """Mask patches + partial-conv ratio, computed fully in-kernel from xp."""
    mp = jnp.clip(jnp.clip(jnp.abs(xp), 0.0, 1e-32) * 1e36, 0.0, 1.0)
    msum = jnp.sum(mp, axis=0, keepdims=True)                       # (1, TM)
    ratio = (slide_winsize / (msum + 1e-8)) * jnp.clip(msum, 0.0, 1.0)
    return mp, ratio


def _pconv_dual_kernel(slide_winsize, n1, w_ref, xp_ref, y1_ref, ds_ref):
    """Fused base_conv1 + downsample: one matmul on concatenated weights.

    w_ref  : (n1 + n2, K)        xp_ref : (K, TM)
    y1_ref : (n1, TM)  (ReLU'd)  ds_ref : (n2, TM)
    """
    xp = xp_ref[...]
    mp, ratio = _mask_ratio(xp, slide_winsize)
    raw = jnp.dot(w_ref[...], xp * mp, preferred_element_type=jnp.float32)
    out = raw * ratio
    y1_ref[...] = jnp.maximum(out[:n1], 0.0).astype(y1_ref.dtype)
    ds_ref[...] = out[n1:].astype(ds_ref.dtype)


def _pconv_kernel(slide_winsize, apply_relu, has_add, *refs):
    """Single PartialConv3d (as matmul) + mask ratio + optional ReLU / add."""
    if has_add:
        w_ref, xp_ref, add_ref, out_ref = refs
    else:
        w_ref, xp_ref, out_ref = refs
        add_ref = None
    xp = xp_ref[...]
    mp, ratio = _mask_ratio(xp, slide_winsize)
    raw = jnp.dot(w_ref[...], xp * mp, preferred_element_type=jnp.float32)
    out = raw * ratio
    if apply_relu:
        out = jnp.maximum(out, 0.0)
    if has_add:
        out = out + add_ref[...]
    out_ref[...] = out.astype(out_ref.dtype)


def _gating_kernel(xx_ref, wg_ref, out_ref):
    """block_gating (avg-pool over H*W + 1x1x1 conv + ReLU) + residual add.

    xx_ref : (C4, T_nd, HW)   wg_ref : (C4, C4)   out_ref : (C4, T_nd, HW)
    """
    xx = xx_ref[...]
    pooled = jnp.mean(xx, axis=-1)                                  # (C4, T_nd)
    g = jnp.dot(wg_ref[...], pooled, preferred_element_type=jnp.float32)
    g = jnp.maximum(g, 0.0)
    out_ref[...] = (xx + g[:, :, None]).astype(out_ref.dtype)


# ----------------------------- Pallas wrappers ----------------------------- #

_TILE_M = 256  # lanes per grid step; multiple of 128, safe for v7x 32MiB scoped VMEM


def _tile_m(M):
    return M if M <= _TILE_M else _TILE_M


def pconv_dual_pallas(xp, w_cat, slide_winsize, n1):
    """Fused conv1 + downsample.  xp: (K, M), w_cat: (n1+n2, K) -> two (·, M)."""
    K, M = xp.shape
    Ct = w_cat.shape[0]
    n2 = Ct - n1
    TM = _tile_m(M)
    kernel = functools.partial(_pconv_dual_kernel, slide_winsize, n1)
    return pl.pallas_call(
        kernel,
        out_shape=(jax.ShapeDtypeStruct((n1, M), jnp.float32),
                   jax.ShapeDtypeStruct((n2, M), jnp.float32)),
        grid=(pl.cdiv(M, TM),),
        in_specs=[pl.BlockSpec((Ct, K), lambda i: (0, 0)),
                  pl.BlockSpec((K, TM), lambda i: (0, i))],
        out_specs=(pl.BlockSpec((n1, TM), lambda i: (0, i)),
                   pl.BlockSpec((n2, TM), lambda i: (0, i))),
        compiler_params=pltpu.CompilerParams(
            dimension_semantics=("parallel",)),
    )(w_cat, xp)


def pconv_single_pallas(xp, w_mat, slide_winsize, *, apply_relu=False,
                        add_to=None):
    """Single PartialConv3d.  xp: (K, M), w_mat: (Cout, K) -> (Cout, M)."""
    K, M = xp.shape
    Cout = w_mat.shape[0]
    TM = _tile_m(M)
    kernel = functools.partial(_pconv_kernel, slide_winsize, apply_relu,
                               add_to is not None)
    in_arrays = [w_mat, xp]
    in_specs = [pl.BlockSpec((Cout, K), lambda i: (0, 0)),
                pl.BlockSpec((K, TM), lambda i: (0, i))]
    if add_to is not None:
        in_arrays.append(add_to)
        in_specs.append(pl.BlockSpec((Cout, TM), lambda i: (0, i)))
    return pl.pallas_call(
        kernel,
        out_shape=jax.ShapeDtypeStruct((Cout, M), jnp.float32),
        grid=(pl.cdiv(M, TM),),
        in_specs=in_specs,
        out_specs=pl.BlockSpec((Cout, TM), lambda i: (0, i)),
        compiler_params=pltpu.CompilerParams(
            dimension_semantics=("parallel",)),
    )(*in_arrays)


def gating_residual_pallas(y2, N, D, H, W, wg):
    """y2: (C4, M) -> xx + block_gating(xx), returned as (C4, N*D, H*W)."""
    C4 = y2.shape[0]
    ND, HW = N * D, H * W
    xx3 = y2.reshape(C4, ND, HW)
    wg_mat = wg.reshape(C4, C4)
    if ND % 8 == 0 and ND > 8:
        T_nd = min(ND, 64)       # tile the (n, d) axis; parallel for v7x 2 TCs
    else:
        T_nd = ND                # full extent (always legal)
    return pl.pallas_call(
        _gating_kernel,
        out_shape=jax.ShapeDtypeStruct((C4, ND, HW), jnp.float32),
        grid=(pl.cdiv(ND, T_nd),),
        in_specs=[pl.BlockSpec((C4, T_nd, HW), lambda i: (0, i, 0)),
                  pl.BlockSpec((C4, C4), lambda i: (0, 0))],
        out_specs=pl.BlockSpec((C4, T_nd, HW), lambda i: (0, i, 0)),
        compiler_params=pltpu.CompilerParams(
            dimension_semantics=("parallel",)),
    )(xx3, wg_mat)


def encoder_block_forward(x, params, block_paddings, ds_padding):
    w1, w2, wd, wg = params["w1"], params["w2"], params["wd"], params["wg"]
    N, C, D, H, W = x.shape
    C4 = w1.shape[0]

    # channel-first layout: all intermediates live as (C, N*D*H*W) -> no
    # transposes between stages (reshape to (C, N, D, H, W) is free).
    x_cn = jnp.transpose(x, (1, 0, 2, 3, 4))

    k1 = tuple(w1.shape[2:])
    kd = tuple(wd.shape[2:])
    slide1 = float(C * k1[0] * k1[1] * k1[2])

    fuse = (k1 == kd) and (tuple(block_paddings[0]) == tuple(ds_padding))
    xp1 = im2col_t(x_cn, k1, block_paddings[0])                   # (C*27, M)
    if fuse:
        # conv1 and downsample share patches, mask and ratio -> one matmul.
        w_cat = jnp.concatenate(
            [w1.reshape(C4, -1), wd.reshape(C4, -1)], axis=0)     # (2*C4, K1)
        y1, ds = pconv_dual_pallas(xp1, w_cat, slide1, C4)
    else:
        y1 = pconv_single_pallas(xp1, w1.reshape(C4, -1), slide1,
                                 apply_relu=True)
        xpd = im2col_t(x_cn, kd, ds_padding)
        slide_d = float(C * kd[0] * kd[1] * kd[2])
        ds = pconv_single_pallas(xpd, wd.reshape(C4, -1), slide_d)

    # xx = base_conv2(relu(conv1_out), mask) + downsample_out  (mask in-kernel)
    k2 = tuple(w2.shape[2:])
    slide2 = float(C4 * k2[0] * k2[1] * k2[2])
    y1_sp = y1.reshape(C4, N, D, H, W)
    xp2 = im2col_t(y1_sp, k2, block_paddings[1])                  # (4C*27, M)
    y2 = pconv_single_pallas(xp2, w2.reshape(C4, -1), slide2, add_to=ds)

    # xx + block_gating(xx)
    out = gating_residual_pallas(y2, N, D, H, W, wg)              # (C4, ND, HW)
    out = out.reshape(C4, N, D, H, W)
    return jnp.transpose(out, (1, 0, 2, 3, 4))                    # NCDHW


# ------------------------- pure-JAX reference (check) ----------------------- #

def _ref_pconv(x, mask, w, pad):
    pads = [(p, p) for p in pad]
    dn = lax.conv_dimension_numbers(x.shape, w.shape, ("NCDHW", "OIDHW", "NCDHW"))
    raw = lax.conv_general_dilated(x * mask, w, (1, 1, 1), pads,
                                   dimension_numbers=dn)
    um = lax.conv_general_dilated(mask, jnp.ones_like(w), (1, 1, 1), pads,
                                  dimension_numbers=dn)
    slide = float(w.shape[1] * w.shape[2] * w.shape[3] * w.shape[4])
    ratio = slide / (um + 1e-8) * jnp.clip(um, 0.0, 1.0)
    return raw * ratio


def encoder_block_reference(x, params, block_paddings, ds_padding):
    w1, w2, wd, wg = params["w1"], params["w2"], params["wd"], params["wg"]
    C4 = w1.shape[0]
    m = get_not_zero_position(x)
    xx = jnp.maximum(_ref_pconv(x, m, w1, block_paddings[0]), 0.0)
    xx = _ref_pconv(xx, get_not_zero_position(xx), w2, block_paddings[1])
    xx = xx + _ref_pconv(x, m, wd, ds_padding)
    pooled = jnp.mean(xx, axis=(3, 4), keepdims=True)   # AdaptiveAvgPool3d((D,1,1))
    g = jnp.einsum("oc,ncdhw->nodhw", wg.reshape(C4, C4), pooled)
    return xx + jnp.maximum(g, 0.0)


if __name__ == "__main__":
    key = jax.random.PRNGKey(0)
    k_x, k_m, k1, k2, k3, k4 = jax.random.split(key, 6)

    # Module config: in_channels=2, input_matrix_num=D=4,
    # block_kernels=[3,3], block_paddings=[1,1], ds_kernel=3, ds_padding=1
    N, C, D, H, W = 2, 2, 4, 8, 8
    C4 = 4 * C
    block_paddings = [(1, 1, 1), (1, 1, 1)]
    ds_padding = (1, 1, 1)

    x = jax.random.normal(k_x, (N, C, D, H, W), jnp.float32)
    keep = jax.random.bernoulli(k_m, 0.7, (N, C, D, H, W))
    x = jnp.where(keep, x, 0.0)          # holes -> non-trivial partial-conv mask

    params = {
        "w1": 0.1 * jax.random.normal(k1, (C4, C, 3, 3, 3), jnp.float32),
        "w2": 0.1 * jax.random.normal(k2, (C4, C4, 3, 3, 3), jnp.float32),
        "wd": 0.1 * jax.random.normal(k3, (C4, C, 3, 3, 3), jnp.float32),
        "wg": 0.1 * jax.random.normal(k4, (C4, C4, 1, 1, 1), jnp.float32),
    }

    out = jax.block_until_ready(
        encoder_block_forward(x, params, block_paddings, ds_padding))
    ref = jax.block_until_ready(
        encoder_block_reference(x, params, block_paddings, ds_padding))

    assert out.shape == (N, C4, D, H, W), out.shape
    assert jnp.allclose(out, ref, rtol=1e-4, atol=1e-4), \
        float(jnp.max(jnp.abs(out - ref)))
    print("KERNEL_OK")
</pallas_src>

<mosaic_0001>
module attributes {stable_mosaic.version = 11 : i64} {
  func.func @_pconv_dual_kernel(%arg0: i32, %arg1: memref<16x54xf32, #tpu.memory_space<vmem>>, %arg2: memref<54x256xf32, #tpu.memory_space<vmem>>, %arg3: memref<8x256xf32, #tpu.memory_space<vmem>>, %arg4: memref<8x256xf32, #tpu.memory_space<vmem>>) attributes {dimension_semantics = [#tpu.dimension_semantics<parallel>], iteration_bounds = array<i64: 2>, scalar_prefetch = 0 : i64, scratch_operands = 0 : i64, tpu.core_type = #tpu.core_type<tc>, window_params = [{pipeline_mode = #tpu.pipeline_mode<synchronous>, transform_indices = @transform_0, window_bounds = array<i64: 16, 54>}, {transform_indices = @transform_1, window_bounds = array<i64: 54, 256>}, {transform_indices = @transform_2, window_bounds = array<i64: 8, 256>}, {transform_indices = @transform_3, window_bounds = array<i64: 8, 256>}]} {
    %c0 = arith.constant 0 : index
    %c0_0 = arith.constant 0 : index
    %0 = vector.load %arg2[%c0, %c0_0] : memref<54x256xf32, #tpu.memory_space<vmem>>, vector<54x256xf32>
    %1 = math.absf %0 : vector<54x256xf32>
    %cst = arith.constant 0.000000e+00 : f32
    %cst_1 = arith.constant 1.000000e-32 : f32
    %2 = vector.broadcast %cst : f32 to vector<54x256xf32>
    %3 = arith.maximumf %2, %1 : vector<54x256xf32>
    %4 = vector.broadcast %cst_1 : f32 to vector<54x256xf32>
    %5 = arith.minimumf %4, %3 : vector<54x256xf32>
    %cst_2 = arith.constant 9.99999961E+35 : f32
    %6 = vector.broadcast %cst_2 : f32 to vector<54x256xf32>
    %7 = arith.mulf %5, %6 : vector<54x256xf32>
    %cst_3 = arith.constant 0.000000e+00 : f32
    %cst_4 = arith.constant 1.000000e+00 : f32
    %8 = vector.broadcast %cst_3 : f32 to vector<54x256xf32>
    %9 = arith.maximumf %8, %7 : vector<54x256xf32>
    %10 = vector.broadcast %cst_4 : f32 to vector<54x256xf32>
    %11 = arith.minimumf %10, %9 : vector<54x256xf32>
    %cst_5 = arith.constant dense<0.000000e+00> : vector<256xf32>
    %12 = vector.multi_reduction <add>, %11, %cst_5 [0] : vector<54x256xf32> to vector<256xf32>
    %13 = vector.shape_cast %12 : vector<256xf32> to vector<1x256xf32>
    %cst_6 = arith.constant 9.99999993E-9 : f32
    %14 = vector.broadcast %cst_6 : f32 to vector<1x256xf32>
    %15 = arith.addf %13, %14 : vector<1x256xf32>
    %cst_7 = arith.constant 5.400000e+01 : f32
    %16 = vector.broadcast %cst_7 : f32 to vector<1x256xf32>
    %17 = arith.divf %16, %15 : vector<1x256xf32>
    %cst_8 = arith.constant 0.000000e+00 : f32
    %cst_9 = arith.constant 1.000000e+00 : f32
    %18 = vector.broadcast %cst_8 : f32 to vector<1x256xf32>
    %19 = arith.maximumf %18, %13 : vector<1x256xf32>
    %20 = vector.broadcast %cst_9 : f32 to vector<1x256xf32>
    %21 = arith.minimumf %20, %19 : vector<1x256xf32>
    %22 = arith.mulf %17, %21 : vector<1x256xf32>
    %c0_10 = arith.constant 0 : index
    %c0_11 = arith.constant 0 : index
    %23 = vector.load %arg1[%c0_10, %c0_11] : memref<16x54xf32, #tpu.memory_space<vmem>>, vector<16x54xf32>
    %24 = arith.mulf %0, %11 : vector<54x256xf32>
    %cst_12 = arith.constant dense<0.000000e+00> : vector<16x256xf32>
    %25 = tpu.matmul %23, %24, %cst_12 {dimension_numbers = #tpu.dot_dimension_numbers<[1], [0], [0], [1], [0, 0, 1, 1], [], []>} : vector<16x54xf32>, vector<54x256xf32>, vector<16x256xf32> -> vector<16x256xf32>
    %26 = vector.broadcast %22 : vector<1x256xf32> to vector<16x256xf32>
    %27 = arith.mulf %25, %26 : vector<16x256xf32>
    %28 = vector.extract_strided_slice %27 {offsets = [0, 0], sizes = [8, 256], strides = [1, 1]} : vector<16x256xf32> to vector<8x256xf32>
    %cst_13 = arith.constant 0.000000e+00 : f32
    %29 = vector.broadcast %cst_13 : f32 to vector<8x256xf32>
    %30 = arith.maximumf %28, %29 : vector<8x256xf32>
    %c0_14 = arith.constant 0 : index
    %c0_15 = arith.constant 0 : index
    %31 = vector.load %arg3[%c0_14, %c0_15] : memref<8x256xf32, #tpu.memory_space<vmem>>, vector<8x256xf32>
    tpu.vector_store %arg3[%c0_14, %c0_15], %30 {strides = array<i32>} : memref<8x256xf32, #tpu.memory_space<vmem>>, vector<8x256xf32>,
    %32 = vector.extract_strided_slice %27 {offsets = [8, 0], sizes = [8, 256], strides = [1, 1]} : vector<16x256xf32> to vector<8x256xf32>
    %c0_16 = arith.constant 0 : index
    %c0_17 = arith.constant 0 : index
    %33 = vector.load %arg4[%c0_16, %c0_17] : memref<8x256xf32, #tpu.memory_space<vmem>>, vector<8x256xf32>
    tpu.vector_store %arg4[%c0_16, %c0_17], %32 {strides = array<i32>} : memref<8x256xf32, #tpu.memory_space<vmem>>, vector<8x256xf32>,
    return
  }
  func.func @transform_0(%arg0: i32) -> (i32, i32) {
    %c0_i32 = arith.constant 0 : i32
    %c0_i32_0 = arith.constant 0 : i32
    %c0_i32_1 = arith.constant 0 : i32
    return %c0_i32, %c0_i32_0 : i32, i32
  }
  func.func @transform_1(%arg0: i32) -> (i32, i32) {
    %c0_i32 = arith.constant 0 : i32
    %c0_i32_0 = arith.constant 0 : i32
    return %c0_i32, %arg0 : i32, i32
  }
  func.func @transform_2(%arg0: i32) -> (i32, i32) {
    %c0_i32 = arith.constant 0 : i32
    %c0_i32_0 = arith.constant 0 : i32
    return %c0_i32, %arg0 : i32, i32
  }
  func.func @transform_3(%arg0: i32) -> (i32, i32) {
    %c0_i32 = arith.constant 0 : i32
    %c0_i32_0 = arith.constant 0 : i32
    return %c0_i32, %arg0 : i32, i32
  }
}

</mosaic_0001>

<bundles_post_ra>
// kernel: tpu_custom_call.1
= control target key start
LH: loop header
LB: loop body
LE: loop exit
PB: predicated region body
PF: predicated region fallthrough
CT: control target
= control target key end

     0   :  { %9 = vsyncpa [#allocation3], 0  ;;  %s1175_s0 = inlined_call_operand.hbm [shape: f32[16,54], index: 0, kind: input, shape index: {}]   ;;  %s1176_s1 = inlined_call_operand.hbm [shape: f32[54,512], index: 1, kind: input, shape index: {}]   ;;  %s1177_s2 = inlined_call_operand.hbm [shape: f32[8,512], index: 2, kind: output, shape index: {0}]   ;;  %s1178_s3 = inlined_call_operand.hbm [shape: f32[8,512], index: 3, kind: output, shape index: {1}]  }
   0x1   :  { %10 = vsyncpa [#allocation6], 0 }
   0x2   :  { %12 = vsyncpa [#allocation6 + $0x1], 0 }
   0x3   :  { %13 = vsyncpa [#allocation4], 0 }
   0x4   :  { %15 = vsyncpa [#allocation4 + $0x1], 0 }
   0x5   :  { %16 = vsyncpa [#allocation9], 0 }
   0x6   :  { %18 = vsyncpa [#allocation9 + $0x1], 0  ;;  %s926_s12 = smov 0   ;;  %s928_s13 = smov 0  }
   0x7   :  { %s930_s14 = smov 0   ;;  %s932_s15 = smov 0  }
   0x8 LB: > { %s947_s16 = sadd.s32 4294967295, %s898_s15   ;;  %s622_s17 = sadd.s32 4294967294, %s898_s15   ;;  %s898_s15 = sphi %s932_s15, %s1188_s15   ;;  %s894_s14 = sphi %s930_s14, %s1187_s14   ;;  %s890_s13 = sphi %s928_s13, %s1186_s13   ;;  %s886_s12 = sphi %s926_s12, %s1185_s12  }
   0x9   : > { %p65_p0 = scmp.ne.s32.totalorder %s890_s13, %s886_s12  ;;  %p66_p1 = scmp.eq.s32.totalorder %s947_s16, 0 }
   0xa   : > { %p89_p2 = scmp.eq.s32.totalorder %s947_s16, 1  ;;  %p95_p3 = scmp.eq.s32.totalorder %s622_s17, 1 }
   0xb   : > { %p956_p4 = por %p66_p1, %p65_p0  ;;  %p623_p5 = scmp.ge.s32.totalorder %s898_s15, 1 }
   0xc   : > { %p961_p6 = por %p95_p3, %p65_p0  ;;  %p128_p7 = scmp.lt.s32.totalorder %s898_s15, 3 }
   0xd   : > { %s139_s22 = sshll.u32 %s1175_s0, 4  ;;  %s900_s24 = smov [#allocation2]   ;;  %s140_s22 = int_to_ptr.hbm [resolvable:$true] %s139_s22 }
   0xe   : > { %p969_p8 = pnand %p623_p5, %p128_p7  ;;  %s141_s25 = sshll.u32 %s900_s24, 4  ;;  %s142_s25 = int_to_ptr.vmem [resolvable:$true] %s141_s25 }
   0xf   : > { %s979_s26 = sadd.s32 1, %s898_s15   ;;  %s901_s27 = smov 128  }
  0x10   : > { %p675_p9 = pneg %p969_p8  ;;  %s902_s28 = smov 8  }
  0x11   : > { %s49_s29 = ssub.s32 %s898_s15, %s979_s26  ;;  %s52_s30 = sadd.s32 1, %s894_s14 }
  0x12   : > { %p676_p10 = pnand %p675_p9, %p66_p1  ;;  %p50_p12 = scmp.eq.s32.totalorder %s49_s29, 0 }
  0x13   : > { %p59_p13 = scmp.ne.s32.totalorder %s894_s14, %s890_s13  ;;  %p60_p0 = scmp.eq.s32.totalorder %s898_s15, 0 }
  0x14   : > { %678 = dma.hbm_to_vmem [thread:$0]  (!%p676_p10), %s140_s22, 256, %s142_s25, [#allocation3], %s901_s27, %s901_s27, %s902_s28  }
  0x15   : > { %p691_p3 = scmp.lt.s32.totalorder %s898_s15, 2  ;;  %p61_p5 = por %p60_p0, %p59_p13 }
  0x16   : > { %s989_s4 = scalar_select %p50_p12, %s894_s14, %s52_s30  }
  0x17   : > { %p993_p7 = por %p89_p2, %p59_p13  ;;  %s155_s6 = sand.u32 1, %s894_s14  }
  0x18   : > { %s646_s7 = sshll.u32 %s898_s15, 4  ;;  %s663_s8 = smul.u32 112, %s155_s6 }
  0x19   : > { %s164_s11 = scalar_lea.hbm %s1176_s1, %s646_s7  ;;  %p1002_p9 = pnand %p691_p3, %p61_p5 }
  0x1a   : > { %s165_s20 = sshll.u32 %s164_s11, 4  ;;  %s159_s21 = scalar_lea.vmem [#allocation5], %s663_s8  ;;  %s166_s20 = int_to_ptr.hbm [resolvable:$true] %s165_s20 }
  0x1b   : > { %s167_s22 = sshll.u32 %s159_s21, 4  ;;  %s156_s24 = scalar_lea.sflag [#allocation6], %s155_s6  ;;  %s168_s22 = int_to_ptr.vmem [resolvable:$true] %s167_s22 }
  0x1c   : > { %s766_s25 = sshra.s32 %s166_s20, 4  ;;  %p770_p10 = pneg %p1002_p9  ;;  %s767_s25 = int_to_ptr.hbm [resolvable:$true] %s766_s25 }
  0x1d   : > { %s768_s27 = scalar_lea.hbm %s767_s25, 112  ;;  %s773_s30 = scalar_lea.hbm %s1176_s1, 224 }
  0x1e   : > { %p769_p2 = scmp.ne.s32.totalorder %s767_s25, %s768_s27  ;;  %p774_p0 = scmp.lt.s32.totalorder %s767_s25, %s1176_s1 }
  0x1f   : > { %p775_p3 = scmp.lt.s32.totalorder %s773_s30, %s768_s27 }
  0x20   : > { %p771_p12 = pnand %p770_p10, %p769_p2 }
  0x21   : > { %p776_p5 = por %p775_p3, %p774_p0 }
  0x22   : > { %p772_p13 = pneg %p771_p12 }
  0x24   : > { %p777_p11 = pnand %p776_p5, %p772_p13 }
  0x26   : > { %780 = shalt.err (!%p777_p11)
}
  0x27   : > { %s903_s6 = smov 512   ;;  %s904_s8 = smov 256  }
  0x28   : > { %s905_s10 = smov 16   ;;  %179 = sbr.rel (%p969_p8) target bundleno = 234 (0xea), region = 28 }
  0x29   : > { %682 = dma.hbm_to_vmem [thread:$0]  (!%p1002_p9), %s166_s20, 1792, %s168_s22, %s156_s24, %s903_s6, %s904_s8, %s905_s10  }
  0x2d   : > { %869 = dma.done.wait (%p66_p1), [#allocation3], 256  }
  0x2e   : > { %871 = vsyncadd (%p66_p1), [#allocation3], 4294967040  ;;  %s1023_s11 = sand.u32 1, %s890_s13  }
  0x2f   : > { %s664_s21 = smul.u32 112, %s1023_s11  ;;  %s187_s25 = scalar_lea.sflag [#allocation6], %s1023_s11 }
  0x31   : > { %s1027_s27 = scalar_lea.vmem [#allocation5], %s664_s21 }
  0x32   : > { %873 = dma.done.wait (%p956_p4), %s187_s25, 1792  }
  0x33   : > { %875 = vsyncadd (%p956_p4), %s187_s25, 4294965504  ;;  %v234_v0 = vld [vmem:[%s1027_s27 + $0x60] sm:$0x3f]  ;;  %v235_v1 = vld [vmem:[%s1027_s27 + $0x68] sm:$0x3f]  ;;  %vm325_vm0 = vcmask 1045504  }
  0x34   : > { %v232_v2 = vld [vmem:[%s1027_s27 + $0x50] sm:$0xff]  ;;  %v248_v3 = vand.u32 2147483647, %v234_v0  ;;  %v249_v4 = vand.u32 2147483647, %v235_v1  ;;  %v233_v6 = vld [vmem:[%s1027_s27 + $0x58] sm:$0xff] }
  0x35   : > { %v246_v5 = vand.u32 2147483647, %v232_v2  ;;  %v230_v7 = vld [vmem:[%s1027_s27 + $0x40] sm:$0xff]  ;;  %v231_v8 = vld [vmem:[%s1027_s27 + $0x48] sm:$0xff]  ;;  %v247_v12 = vand.u32 2147483647, %v233_v6 }
  0x36   : > { %v262_v9 = vmax.f32 %v248_v3, 0.0  ;;  %v263_v10 = vmax.f32 %v249_v4, 0.0  ;;  %v1040_v13 = vld [vmem:[%s1027_s27 + $0x30] sm:$0xff]  ;;  %v244_v14 = vand.u32 2147483647, %v230_v7  ;;  %v1044_v34 = vld [vmem:[%s1027_s27 + $0x38] sm:$0xff] }
  0x37   : > { %v260_v11 = vmax.f32 %v246_v5, 0.0  ;;  %v245_v15 = vand.u32 2147483647, %v231_v8  ;;  %v242_v16 = vand.u32 2147483647, %v1040_v13  ;;  %v261_v20 = vmax.f32 %v247_v12, 0.0 }
  0x38   : > { %v276_v17 = vmin.f32 %v262_v9, 1e-32  ;;  %v277_v18 = vmin.f32 %v263_v10, 1e-32  ;;  %v258_v21 = vmax.f32 %v244_v14, 0.0  ;;  %v1049_v42 = vld [vmem:[%s1027_s27 + $0x20] sm:$0xff] }
  0x39   : > { %v274_v19 = vmin.f32 %v260_v11, 1e-32  ;;  %v259_v22 = vmax.f32 %v245_v15, 0.0  ;;  %v256_v23 = vmax.f32 %v242_v16, 0.0  ;;  %v275_v27 = vmin.f32 %v261_v20, 1e-32 }
  0x3a   : > { %v290_v24 = vmul.f32 1e+36, %v276_v17  ;;  %v291_v25 = vmul.f32 1e+36, %v277_v18  ;;  %v272_v28 = vmin.f32 %v258_v21, 1e-32 }
  0x3b   : > { %v288_v26 = vmul.f32 1e+36, %v274_v19  ;;  %v273_v29 = vmin.f32 %v259_v22, 1e-32  ;;  %v270_v33 = vmin.f32 %v256_v23, 1e-32 }
  0x3c   : > { %v304_v30 = vmax.f32 %v290_v24, 0.0  ;;  %v305_v31 = vmax.f32 %v291_v25, 0.0  ;;  %v289_v35 = vmul.f32 1e+36, %v275_v27  ;;  %v286_v36 = vmul.f32 1e+36, %v272_v28 }
  0x3d   : > { %v302_v32 = vmax.f32 %v288_v26, 0.0  ;;  %v287_v37 = vmul.f32 1e+36, %v273_v29  ;;  %v284_v41 = vmul.f32 1e+36, %v270_v33  ;;  %v1053_v47 = vld [vmem:[%s1027_s27 + $0x28] sm:$0xff] }
  0x3e   : > { %v318_v38 = vmin.f32 %v304_v30, 1.0  ;;  %v319_v39 = vmin.f32 %v305_v31, 1.0  ;;  %v303_v43 = vmax.f32 %v289_v35, 0.0  ;;  %v300_v44 = vmax.f32 %v286_v36, 0.0  ;;  %v1062_v52 = vld [vmem:[%s1027_s27 + $0x10] sm:$0xff]  ;;  %v1072_v57 = vld [vmem:[%s1027_s27 + $0x18] sm:$0xff] }
  0x3f   : > { %v1046_v40 = vmin.f32 %v302_v32, 1.0  ;;  %v301_v45 = vmax.f32 %v287_v37, 0.0  ;;  %v243_v46 = vand.u32 2147483647, %v1044_v34  ;;  %v1075_v58 = vld [vmem:[%s1027_s27] sm:$0xff]  ;;  %v298_v59 = vmax.f32 %v284_v41, 0.0 }
  0x40   : > { %v1056_v48 = vsel %vm325_vm0, %v318_v38, 0.0  ;;  %v399_v49 = vmul.f32 %v318_v38, %v234_v0  ;;  %v1059_v50 = vsel %vm325_vm0, %v319_v39, 0.0  ;;  %v400_v51 = vmul.f32 %v319_v39, %v235_v1  ;;  %v1090_v10 = vld [vmem:[%s1027_s27 + $0x8] sm:$0xff]  ;;  %s630_s18 = sshll.u32 %s1023_s11, 4  ;;  %s647_s23 = sshll.u32 %s947_s16, 4 }
  0x41   : > { %v397_v53 = vmul.f32 %v1046_v40, %v232_v2  ;;  %v1065_v54 = vmin.f32 %v303_v43, 1.0  ;;  %v1067_v55 = vmin.f32 %v300_v44, 1.0  ;;  %v1069_v56 = vmin.f32 %v301_v45, 1.0  ;;  %s487_s22 = scalar_lea.hbm %s1177_s2, %s647_s23  ;;  %s502_s29 = scalar_lea.hbm %s1178_s3, %s647_s23 }
  0x42   : > { %649 = vmatpush.msk.msra.mxu2 %vm325_vm0, %v399_v49  ;;  %656 = vmatpush.msk.msra.mxu3 %vm325_vm0, %v400_v51  ;;  %v257_v60 = vmax.f32 %v243_v46, 0.0  ;;  %v240_v61 = vand.u32 2147483647, %v1049_v42  ;;  %v241_v62 = vand.u32 2147483647, %v1053_v47  ;;  %v1087_v3 = vmin.f32 %v298_v59, 1.0 }
  0x43   : > { %v398_v63 = vmul.f32 %v1065_v54, %v233_v6  ;;  %632 = vmatpush.msk.msra.mxu0 %vm325_vm0, %v399_v49  ;;  %v395_v0 = vmul.f32 %v1067_v55, %v230_v7  ;;  %635 = vmatpush.msk.msra.mxu1 %vm325_vm0, %v400_v51  ;;  %v396_v1 = vmul.f32 %v1069_v56, %v231_v8  ;;  %v238_v2 = vand.u32 2147483647, %v1062_v52  ;;  %s211_s30 = scalar_lea.vmem [#allocation7], %s630_s18  ;;  %s491_s9 = sshll.u32 %s487_s22, 4  ;;  %s492_s9 = int_to_ptr.hbm [resolvable:$true] %s491_s9 }
  0x44   : > { %650 = vmatpush.msra.mxu2 %v397_v53  ;;  %v271_v4 = vmin.f32 %v257_v60, 1e-32  ;;  %v254_v5 = vmax.f32 %v240_v61, 0.0  ;;  %v255_v9 = vmax.f32 %v241_v62, 0.0  ;;  %v239_v11 = vand.u32 2147483647, %v1072_v57 }
  0x45   : > { %657 = vmatpush.msra.mxu3 %v398_v63  ;;  %424 = vmatpush.msra.mxu0 %v397_v53  ;;  %v252_v6 = vmax.f32 %v238_v2, 0.0  ;;  %v236_v7 = vand.u32 2147483647, %v1075_v58  ;;  %v393_v8 = vmul.f32 %v1087_v3, %v1040_v13  ;;  %v237_v19 = vand.u32 2147483647, %v1090_v10  ;;  %v386_v60 = vld [vmem:[#allocation2 + $0x8] sm:$0xff] }
  0x46   : > { %651 = vmatpush.msra.mxu2 %v395_v0  ;;  %447 = vmatpush.msra.mxu1 %v398_v63  ;;  %v285_v12 = vmul.f32 1e+36, %v271_v4  ;;  %v268_v14 = vmin.f32 %v254_v5, 1e-32  ;;  %v269_v15 = vmin.f32 %v255_v9, 1e-32 }
  0x47   : > { %658 = vmatpush.msra.mxu3 %v396_v1  ;;  %425 = vmatpush.msra.mxu0 %v395_v0  ;;  %v266_v16 = vmin.f32 %v252_v6, 1e-32  ;;  %v253_v17 = vmax.f32 %v239_v11, 0.0  ;;  %v250_v18 = vmax.f32 %v236_v7, 0.0  ;;  %v251_v28 = vmax.f32 %v237_v19, 0.0  ;;  %v385_v62 = vld [vmem:[#allocation2] sm:$0xff] }
  0x48   : > { %652 = vmatpush.msra.mxu2 %v393_v8  ;;  %v299_v20 = vmax.f32 %v285_v12, 0.0  ;;  %v282_v21 = vmul.f32 1e+36, %v268_v14  ;;  %448 = vmatpush.msra.mxu1 %v396_v1  ;;  %v283_v22 = vmul.f32 1e+36, %v269_v15  ;;  %vm401_vm1 = vcmask 441344  }
  0x49   : > { %426 = vmatpush.msra.mxu0 %v393_v8  ;;  %v280_v23 = vmul.f32 1e+36, %v266_v16  ;;  %v267_v24 = vmin.f32 %v253_v17, 1e-32  ;;  %v264_v13 = vmin.f32 %v250_v18, 1e-32 }
  0x4a   : > { %v313_v25 = vmin.f32 %v299_v20, 1.0  ;;  %v296_v26 = vmax.f32 %v282_v21, 0.0  ;;  %v297_v27 = vmax.f32 %v283_v22, 0.0  ;;  %v265_v36 = vmin.f32 %v251_v28, 1e-32  ;;  %s489_s7 = sshll.u32 %s211_s30, 4  ;;  %s490_s7 = int_to_ptr.vmem [resolvable:$true] %s489_s7 }
  0x4b   : > { %v294_v29 = vmax.f32 %v280_v23, 0.0  ;;  %v281_v30 = vmul.f32 1e+36, %v267_v24  ;;  %v278_v31 = vmul.f32 1e+36, %v264_v13  ;;  %s1123_s16 = scalar_lea.vmem [#allocation8], %s630_s18 }
  0x4c   : > { %v394_v32 = vmul.f32 %v313_v25, %v1044_v34  ;;  %v310_v33 = vmin.f32 %v296_v26, 1.0  ;;  %v311_v35 = vmin.f32 %v297_v27, 1.0  ;;  %v279_v44 = vmul.f32 1e+36, %v265_v36  ;;  %s504_s6 = sshll.u32 %s1123_s16, 4  ;;  %s506_s8 = sshll.u32 %s502_s29, 4  ;;  %s1126_s6 = int_to_ptr.vmem [resolvable:$true] %s504_s6  ;;  %s1128_s8 = int_to_ptr.hbm [resolvable:$true] %s506_s8 }
  0x4d   : > { %v308_v37 = vmin.f32 %v294_v29, 1.0  ;;  %v295_v38 = vmax.f32 %v281_v30, 0.0  ;;  %v292_v39 = vmax.f32 %v278_v31, 0.0  ;;  %s471_s10 = scalar_lea.sflag [#allocation4], %s1023_s11  ;;  %s810_s21 = sshra.s32 %s492_s9, 4  ;;  %s811_s21 = int_to_ptr.hbm [resolvable:$true] %s810_s21 }
  0x4e   : > { %659 = vmatpush.msra.mxu3 %v394_v32  ;;  %v391_v41 = vmul.f32 %v310_v33, %v1049_v42  ;;  %v392_v43 = vmul.f32 %v311_v35, %v1053_v47  ;;  %449 = vmatpush.msra.mxu1 %v394_v32  ;;  %v293_v34 = vmax.f32 %v279_v44, 0.0  ;;  %s812_s25 = scalar_lea.hbm %s811_s21, 16  ;;  %s816_s23 = scalar_lea.hbm %s1177_s2, 32 }
  0x4f   : > { %v389_v45 = vmul.f32 %v308_v37, %v1062_v52  ;;  %v309_v46 = vmin.f32 %v295_v38, 1.0  ;;  %v306_v49 = vmin.f32 %v292_v39, 1.0  ;;  %p813_p1 = scmp.ne.s32.totalorder %s811_s21, %s812_s25  ;;  %p817_p11 = scmp.lt.s32.totalorder %s811_s21, %s1177_s2 }
  0x50   : > { %653 = vmatpush.msra.mxu2 %v391_v41  ;;  %660 = vmatpush.msra.mxu3 %v392_v43  ;;  %v307_v42 = vmin.f32 %v293_v34, 1.0  ;;  %p818_p9 = scmp.lt.s32.totalorder %s816_s23, %s812_s25 }
  0x51   : > { %v390_v51 = vmul.f32 %v309_v46, %v1072_v57  ;;  %427 = vmatpush.msra.mxu0 %v391_v41  ;;  %v320_v53 = vadd.f32 %v308_v37, %v306_v49  ;;  %v387_v59 = vmul.f32 %v306_v49, %v1075_v58  ;;  %450 = vmatpush.msra.mxu1 %v392_v43  ;;  %p814_p4 = pnand %p813_p1, %p993_p7 }
  0x52   : > { %654 = vmatpush.msra.mxu2 %v389_v45  ;;  %v334_v52 = vadd.f32 %v309_v46, %v307_v42  ;;  %v388_v61 = vmul.f32 %v307_v42, %v1090_v10  ;;  %p819_p2 = por %p818_p9, %p817_p11 }
  0x53   : > { %661 = vmatpush.msra.mxu3 %v390_v51  ;;  %v321_v47 = vadd.f32 %v320_v53, %v310_v33  ;;  %428 = vmatpush.msra.mxu0 %v389_v45  ;;  %p815_p8 = pneg %p814_p4 }
  0x54   : > { %655 = vmatpush.msra.mxu2 %v387_v59  ;;  %451 = vmatpush.msra.mxu1 %v390_v51  ;;  %v335_v58 = vadd.f32 %v334_v52, %v311_v35 }
  0x55   : > { %v322_v57 = vadd.f32 %v321_v47, %v1087_v3  ;;  %634 = vmatmul.msk.f32.vlgmr.msra.gmra.mxu2 %vm401_vm1, %v386_v60  ;;  %429 = vmatpush.msra.mxu0 %v387_v59  ;;  %p820_p10 = pnand %p819_p2, %p815_p8 }
  0x56   : > { %662 = vmatpush.msra.mxu3 %v388_v61  ;;  %452 = vmatpush.msra.mxu1 %v388_v61  ;;  %v336_v0 = vadd.f32 %v335_v58, %v313_v25 }
  0x57   : > { %v323_v63 = vadd.f32 %v322_v57, %v1067_v55  ;;  %637 = vmatmul.msk.f32.vlgmr.msra.gmra.mxu3 %vm401_vm1, %v386_v60  ;;  %633 = vmatmul.msk.f32.vlgmr.msra.gmra.mxu0 %vm401_vm1, %v385_v62 }
  0x58   : > { %636 = vmatmul.msk.f32.vlgmr.msra.gmra.mxu1 %vm401_vm1, %v385_v62  ;;  %v337_v2 = vadd.f32 %v336_v0, %v1069_v56 }
  0x59   : > { %v324_v1 = vadd.f32 %v323_v63, %v1046_v40 }
  0x5a   : > { %v338_v4 = vadd.f32 %v337_v2, %v1065_v54 }
  0x5b   : > { %v327_v3 = vadd.f32 %v1056_v48, %v324_v1 }
  0x5c   : > { %v340_v9 = vadd.f32 %v1059_v50, %v338_v4 }
  0x5d   : > { %v328_v5 = vrot.slane %v327_v3, 4 }
  0x5e   : > { %v341_v55 = vrot.slane %v340_v9, 4 }
  0x5f   : > { %v329_v10 = vadd.f32 %v328_v5, %v327_v3 }
  0x60   : > { %v342_v6 = vadd.f32 %v341_v55, %v340_v9 }
  0x61   : > { %v330_v11 = vrot.slane %v329_v10, 2 }
  0x62   : > { %v343_v7 = vrot.slane %v342_v6, 2 }
  0x63   : > { %v331_v8 = vadd.f32 %v330_v11, %v329_v10 }
  0x64   : > { %v344_v12 = vadd.f32 %v343_v7, %v342_v6 }
  0x65   : > { %v332_v14 = vrot.slane %v331_v8, 1 }
  0x66   : > { %v345_v15 = vrot.slane %v344_v12, 1 }
  0x67   : > { %v333_v16 = vadd.f32 %v332_v14, %v331_v8 }
  0x68   : > { %v346_v40 = vadd.f32 %v345_v15, %v344_v12 }
  0x69   : > { %v347_v17 = vadd.f32 1e-08, %v333_v16  ;;  %v379_v32 = vmax.f32 %v333_v16, 0.0 }
  0x6a   : > { %v348_v56 = vadd.f32 1e-08, %v346_v40  ;;  %v380_v35 = vmax.f32 %v346_v40, 0.0 }
  0x6b   : > { %732 = vrcp.f32 %v347_v17  ;;  %vm354_vm2 = vweird.f32 %v347_v17  ;;  %v360_v23 = vand.u32 2147483648, %v347_v17  ;;  %v358_v13 = vand.u32 2147483647, %v347_v17 }
  0x6c   : > { %734 = vrcp.f32 %v348_v56  ;;  %vm369_vm4 = vweird.f32 %v348_v56  ;;  %v375_v25 = vand.u32 2147483648, %v348_v56  ;;  %v373_v27 = vand.u32 2147483647, %v348_v56 }
  0x6d   : > { %v361_v28 = vor.u32 1.1754944e-38, %v360_v23  ;;  %vm359_vm8 = vcmp.eq.f32.partialorder %v358_v13, 8.507059e+37  ;;  %v381_v38 = vmin.f32 %v379_v32, 1.0  ;;  %v382_v41 = vmin.f32 %v380_v35, 1.0 }
  0x6e   : > { %v376_v30 = vor.u32 1.1754944e-38, %v375_v25  ;;  %vm374_vm9 = vcmp.eq.f32.partialorder %v373_v27, 8.507059e+37 }
  0x71   : > { %v733_v48 = vpop.eup %732 }
  0x72   : > { %v735_v54 = vpop.eup %734  ;;  %v350_v18 = vmul.f32 %v733_v48, %v347_v17  ;;  %vm355_vm3 = vweird.f32 %v733_v48 }
  0x73   : > { %v365_v19 = vmul.f32 %v735_v54, %v348_v56  ;;  %vm370_vm5 = vweird.f32 %v735_v54  ;;  %vm356_vm6 = vmor %vm354_vm2, %vm355_vm3 }
  0x74   : > { %v351_v50 = vsub.f32 1.0, %v350_v18  ;;  %vm371_vm7 = vmor %vm369_vm4, %vm370_vm5 }
  0x75   : > { %v366_v20 = vsub.f32 1.0, %v365_v19 }
  0x76   : > { %v352_v21 = vmul.f32 %v733_v48, %v351_v50 }
  0x77   : > { %v367_v22 = vmul.f32 %v735_v54, %v366_v20 }
  0x78   : > { %v353_v24 = vadd.f32 %v733_v48, %v352_v21 }
  0x79   : > { %v368_v26 = vadd.f32 %v735_v54, %v367_v22 }
  0x7a   : > { %v357_v29 = vsel %vm356_vm6, %v733_v48, %v353_v24 }
  0x7b   : > { %v372_v31 = vsel %vm371_vm7, %v735_v54, %v368_v26  ;;  %v362_v33 = vsel %vm359_vm8, %v361_v28, %v357_v29 }
  0x7c   : > { %v377_v36 = vsel %vm374_vm9, %v376_v30, %v372_v31  ;;  %v363_v37 = vmul.f32 54.0, %v362_v33 }
  0x7d   : > { %v378_v39 = vmul.f32 54.0, %v377_v36 }
  0x7e   : > { %v383_v43 = vmul.f32 %v381_v38, %v363_v37 }
  0x7f   : > { %v384_v44 = vmul.f32 %v382_v41, %v378_v39 }
  0xd4   : > { %v431_v45 = vpop.f32.mrf.mxu0 }
  0xd5   : > { %v460_v46 = vmul.f32 %v431_v45, %v383_v43  ;;  %v454_v49 = vpop.f32.mrf.mxu1 }
  0xd6   : > { %v461_v34 = vmul.f32 %v454_v49, %v384_v44 }
  0xd7   : > { %v464_v51 = vmax.f32 %v460_v46, 0.0 }
  0xd8   : > { %v465_v53 = vmax.f32 %v461_v34, 0.0  ;;  %v434_v59 = vpop.f32.mrf.mxu2 }
  0xd9   : > { %466 = vst [vmem:[%s211_s30] sm:$0xff] %v464_v51  ;;  %v462_v42 = vmul.f32 %v434_v59, %v383_v43 }
  0xda   : > { %467 = vst [vmem:[%s211_s30 + $0x8] sm:$0xff] %v465_v53  ;;  %v457_v60 = vpop.f32.mrf.mxu3 }
  0xdb   : > { %468 = vst [vmem:[%s1123_s16] sm:$0xff] %v462_v42  ;;  %v463_v47 = vmul.f32 %v457_v60, %v384_v44 }
  0xdc   : > { %823 = shalt.err (!%p820_p10)
}
  0xdd   : > { %671 = dma.vmem_to_hbm [thread:$0]  (%p993_p7), %s490_s7, 256, %s492_s9, %s471_s10   ;;  %469 = vst [vmem:[%s1123_s16 + $0x8] sm:$0xff] %v463_v47 }
  0xde   : > { %s476_s22 = scalar_lea.sflag [#allocation9], %s1023_s11  ;;  %s838_s24 = sshra.s32 %s1128_s8, 4  ;;  %s839_s24 = int_to_ptr.hbm [resolvable:$true] %s838_s24 }
  0xdf   : > { %s840_s28 = scalar_lea.hbm %s839_s24, 16  ;;  %s844_s21 = scalar_lea.hbm %s1178_s3, 32 }
  0xe0   : > { %p841_p12 = scmp.ne.s32.totalorder %s839_s24, %s840_s28  ;;  %p845_p3 = scmp.lt.s32.totalorder %s839_s24, %s1178_s3 }
  0xe1   : > { %p846_p5 = scmp.lt.s32.totalorder %s844_s21, %s840_s28 }
  0xe2   : > { %p842_p13 = pnand %p841_p12, %p993_p7 }
  0xe3   : > { %p847_p1 = por %p846_p5, %p845_p3 }
  0xe4   : > { %p843_p0 = pneg %p842_p13 }
  0xe6   : > { %p848_p4 = pnand %p847_p1, %p843_p0 }
  0xe8   : > { %851 = shalt.err (!%p848_p4)
}
  0xe9   : > { %672 = dma.vmem_to_hbm [thread:$0]  (%p993_p7), %s1126_s6, 256, %s1128_s8, %s476_s22  }
  0xea PF: > { %s518_s11 = sand.u32 1, %s886_s12   ;;  %p1184_p8 = scmp.ge.s32.totalorder %s898_s15, 2 }
  0xeb   : > { %s519_s7 = scalar_lea.sflag [#allocation4], %s518_s11 }
  0xec   : > { %p684_p11 = pnand %p1184_p8, %p961_p6 }
  0xee   : > { %p685_p9 = pneg %p684_p11 }
  0xf0   : > { %877 = dma.done.wait (%p685_p9), %s519_s7, 256  }
  0xf1   : > { %879 = vsyncadd (%p685_p9), %s519_s7, 4294967040  ;;  %s529_s9 = scalar_lea.sflag [#allocation9], %s518_s11 }
  0xf2   : > { %881 = dma.done.wait (%p685_p9), %s529_s9, 256  }
  0xf3   : > { %883 = vsyncadd (%p685_p9), %s529_s9, 4294967040  ;;  %p21_p7 = scmp.ge.s32.totalorder %s979_s26, 4   ;;  %s1185_s12 = smov %s890_s13 }
  0xf4   : > { %s1186_s13 = smov %s894_s14  ;;  %s1187_s14 = smov %s989_s4 }
  0xf5   : > { %s1188_s15 = smov %s979_s26  ;;  %23 = sbr.rel (!%p21_p7) target bundleno = 8 (0x8), region = 95 }
  0xfa   :  { %535 = vsyncpa [#allocation3], 1 }
  0xfb   :  { %537 = vsyncpa [#allocation3 + $0x1], 1 }
  0xfc   :  { %538 = vsyncpa [#allocation6], 1 }
  0xfd   :  { %540 = vsyncpa [#allocation6 + $0x1], 1 }
  0xfe   :  { %541 = vsyncpa [#allocation4], 1 }
  0xff   :  { %543 = vsyncpa [#allocation4 + $0x1], 1 }
 0x100   :  { %544 = vsyncpa [#allocation9], 1 }
 0x101   :  { %546 = vsyncpa [#allocation9 + $0x1], 1 }

</bundles_post_ra>
